<compile_context>
chip_gen: v7x
topology: tpu7x:2x2x1
jax: 0.10.0
libtpu: 0.0.40
codegen_flags: <defaults>
</compile_context>

<pallas_src>
import functools

import jax
import jax.numpy as jnp
from jax import lax
from jax.experimental import pallas as pl
from jax.experimental.pallas import tpu as pltpu

EPS = 1e-5
_TARGET_BLOCK_BYTES = 2 * 1024 * 1024      # ~2 MiB streaming blocks
_RESIDENT_MAX_ELEMS = 256 * 1024           # <= 1 MiB f32 -> resident fast path
_VMEM_LIMIT = 32 * 1024 * 1024             # safe on v5e/v6e (128 MiB) and v7x (64 MiB)
_STATS_CORES = 2                           # megacore split of the stats pass (v7x)


def _round_up(a, b):
    return ((a + b - 1) // b) * b


# ---------------------------------------------------------------------------
# Resident fast path: one launch, one HBM read, one HBM write.
# ---------------------------------------------------------------------------
def _resident_kernel(gb_ref, x_ref, o_ref, *, num_el):
    rows, lanes = x_ref.shape
    x = x_ref[...].astype(jnp.float32)
    flat = (lax.broadcasted_iota(jnp.int32, (rows, lanes), 0) * lanes
            + lax.broadcasted_iota(jnp.int32, (rows, lanes), 1))
    valid = flat < num_el
    inv_n = jnp.float32(1.0 / num_el)
    xv = jnp.where(valid, x, 0.0)
    mean = jnp.sum(xv, axis=(0, 1), keepdims=True)[0, 0] * inv_n
    d = jnp.where(valid, x - mean, 0.0)            # exact two-pass biased variance
    var = jnp.sum(d * d, axis=(0, 1), keepdims=True)[0, 0] * inv_n
    inv_std = lax.rsqrt(var + jnp.float32(EPS))
    scale = gb_ref[0] * inv_std
    shift = gb_ref[1] - mean * scale
    o_ref[...] = (x * scale + shift).astype(o_ref.dtype)


# ---------------------------------------------------------------------------
# Streaming phase 0: sum / sum-of-squares (VPU-only per tile, one XLU reduce).
# ---------------------------------------------------------------------------
def _stats_kernel(x_ref, out_ref, acc_ref, sq_ref, *,
                  rows, tile_rows, tiles_per_core):
    p = pl.program_id(0)
    i = pl.program_id(1)

    @pl.when(i == 0)
    def _init():
        acc_ref[...] = jnp.zeros_like(acc_ref)
        sq_ref[...] = jnp.zeros_like(sq_ref)

    x = x_ref[...].astype(jnp.float32)
    # Mask rows past the true extent: ragged last tile, and the clamped
    # duplicate tile used to balance the 2-core split when num_tiles is odd.
    base = (p * tiles_per_core + i) * tile_rows
    row = base + lax.broadcasted_iota(jnp.int32, x.shape, 0)
    x = jnp.where(row < rows, x, 0.0)
    # Pure VPU accumulation per tile; the reduce tree runs once per core.
    acc_ref[...] += x
    sq_ref[...] += x * x

    @pl.when(i == tiles_per_core - 1)
    def _finalize():
        s = jnp.sum(acc_ref[...], axis=(0, 1), keepdims=True)[0, 0]
        q = jnp.sum(sq_ref[...], axis=(0, 1), keepdims=True)[0, 0]
        lane = lax.broadcasted_iota(jnp.int32, out_ref.shape, 2)
        out_ref[...] = jnp.where(lane == 0, s, jnp.where(lane == 1, q, 0.0))


# ---------------------------------------------------------------------------
# Streaming phase 1: y = x * scale + shift (scale/shift as SMEM scalars).
# ---------------------------------------------------------------------------
def _norm_kernel(ss_ref, x_ref, o_ref):
    scale = ss_ref[0]
    shift = ss_ref[1]
    o_ref[...] = (x_ref[...].astype(jnp.float32) * scale + shift).astype(o_ref.dtype)


def wrapped_batch_norm(x, gamma, beta):
    """x: (N, 1, H, W); gamma/beta: (1,). Returns (N, 1, H, W), same dtype."""
    n, c, h, w = x.shape
    assert c == 1, "WrappedBatchNorm wraps nn.BatchNorm2d(1)"
    num_el = n * c * h * w
    dtype = x.dtype
    itemsize = jnp.dtype(dtype).itemsize
    gb = jnp.stack([gamma[0].astype(jnp.float32), beta[0].astype(jnp.float32)])

    # -------- resident single-pass path (small inputs) ---------------------
    if num_el <= _RESIDENT_MAX_ELEMS:
        lanes = 128
        rows = _round_up(max(1, pl.cdiv(num_el, lanes)), 8)
        slab = rows * lanes
        x2 = jnp.pad(x.reshape(-1), (0, slab - num_el)).reshape(rows, lanes)
        out2 = pl.pallas_call(
            functools.partial(_resident_kernel, num_el=num_el),
            out_shape=jax.ShapeDtypeStruct((rows, lanes), dtype),
            grid=(1,),
            in_specs=[pl.BlockSpec(memory_space=pltpu.MemorySpace.SMEM),
                      pl.BlockSpec((rows, lanes), lambda i: (0, 0))],
            out_specs=pl.BlockSpec((rows, lanes), lambda i: (0, 0)),
            compiler_params=pltpu.CompilerParams(
                dimension_semantics=("arbitrary",),
                vmem_limit_bytes=_VMEM_LIMIT),
        )(gb, x2)
        return out2.reshape(-1)[:num_el].reshape(n, c, h, w)

    # -------- streaming two-phase path (large inputs) ----------------------
    # Lane-dense 2-D view.  Prefer a lane width that divides num_el so the
    # view is a pure reshape: no pad on input, no slice on output.
    lanes = next((cand for cand in (512, 256, 128) if num_el % cand == 0), None)
    if lanes is not None:
        rows = num_el // lanes
        x2 = x.reshape(rows, lanes)
        padded = False
    else:
        # TODO(synk): the ragged tail (< 128 elements) could be split off and
        # handled in plain JAX to avoid this pad/slice pair entirely.
        lanes = 512
        rows = pl.cdiv(num_el, lanes)
        x2 = jnp.pad(x.reshape(-1), (0, rows * lanes - num_el)).reshape(rows, lanes)
        padded = True

    sub = 8 * max(1, 4 // itemsize)                       # 8 f32 / 16 bf16 / 32 int8
    tile_rows = max(sub, (_TARGET_BLOCK_BYTES // (lanes * itemsize)) // sub * sub)
    tile_rows = min(tile_rows, _round_up(rows, sub))
    num_tiles = pl.cdiv(rows, tile_rows)
    ncores = _STATS_CORES if num_tiles >= _STATS_CORES else 1
    tiles_per_core = pl.cdiv(num_tiles, ncores)

    def stats_in_map(p, i):
        # Clamp so the balancing duplicate tile (odd num_tiles) stays in
        # bounds; its contribution is masked to zero inside the kernel.
        return (jnp.minimum(p * tiles_per_core + i, num_tiles - 1), 0)

    st = pl.pallas_call(
        functools.partial(_stats_kernel, rows=rows, tile_rows=tile_rows,
                          tiles_per_core=tiles_per_core),
        out_shape=jax.ShapeDtypeStruct((ncores, 8, 128), jnp.float32),
        grid=(ncores, tiles_per_core),
        in_specs=[pl.BlockSpec((tile_rows, lanes), stats_in_map)],
        out_specs=pl.BlockSpec((1, 8, 128), lambda p, i: (p, 0, 0)),
        scratch_shapes=[pltpu.VMEM((tile_rows, lanes), jnp.float32),
                        pltpu.VMEM((tile_rows, lanes), jnp.float32)],
        compiler_params=pltpu.CompilerParams(
            dimension_semantics=("parallel", "arbitrary"),
            vmem_limit_bytes=_VMEM_LIMIT),
    )(x2)

    # Tiny scalar math (combine per-core partials, fold the affine) in JAX.
    # TODO(synk): single-pass E[x^2]-E[x]^2 can lose precision when |mean|>>std;
    # a streaming two-pass variance would cost one extra read of x.
    s = jnp.sum(st[:, 0, 0])
    sq = jnp.sum(st[:, 0, 1])
    inv_n = jnp.float32(1.0 / num_el)
    mean = s * inv_n
    var = jnp.maximum(sq * inv_n - mean * mean, 0.0)      # biased variance
    inv_std = lax.rsqrt(var + jnp.float32(EPS))
    scale = gb[0] * inv_std
    shift = gb[1] - mean * scale
    ss = jnp.stack([scale, shift])                        # (2,) f32 -> SMEM

    out2 = pl.pallas_call(
        _norm_kernel,
        out_shape=jax.ShapeDtypeStruct((rows, lanes), dtype),
        grid=(num_tiles,),
        in_specs=[pl.BlockSpec(memory_space=pltpu.MemorySpace.SMEM),
                  pl.BlockSpec((tile_rows, lanes), lambda i: (i, 0))],
        out_specs=pl.BlockSpec((tile_rows, lanes), lambda i: (i, 0)),
        compiler_params=pltpu.CompilerParams(
            dimension_semantics=("parallel",),
            vmem_limit_bytes=_VMEM_LIMIT),
    )(ss, x2)

    if padded:
        return out2.reshape(-1)[:num_el].reshape(n, c, h, w)
    return out2.reshape(n, c, h, w)


def _reference(x, gamma, beta):
    mean = jnp.mean(x, axis=(0, 2, 3), keepdims=True)
    var = jnp.mean((x - mean) ** 2, axis=(0, 2, 3), keepdims=True)
    g = gamma.reshape(1, -1, 1, 1)
    b = beta.reshape(1, -1, 1, 1)
    return (x - mean) * lax.rsqrt(var + EPS) * g + b


if __name__ == "__main__":
    key = jax.random.PRNGKey(0)
    # BatchNorm2d(1) default affine params: weight = 1, bias = 0.
    gamma = jnp.ones((1,), dtype=jnp.float32)
    beta = jnp.zeros((1,), dtype=jnp.float32)

    # Small shape -> resident single-launch path.
    x_small = jax.random.normal(key, (2, 1, 16, 16), dtype=jnp.float32)
    out_small = jax.block_until_ready(wrapped_batch_norm(x_small, gamma, beta))
    ref_small = _reference(x_small, gamma, beta)
    assert out_small.shape == x_small.shape and out_small.dtype == x_small.dtype
    assert jnp.allclose(out_small, ref_small, atol=1e-4, rtol=1e-5), (
        float(jnp.max(jnp.abs(out_small - ref_small))))

    # Larger shape -> streaming two-phase path (zero-copy 2-D view, odd tile
    # count so the 2-core split + in-kernel masking are exercised).
    x_big = jax.random.normal(key, (10, 1, 512, 250), dtype=jnp.float32)
    out_big = jax.block_until_ready(wrapped_batch_norm(x_big, gamma, beta))
    ref_big = _reference(x_big, gamma, beta)
    assert out_big.shape == x_big.shape and out_big.dtype == x_big.dtype
    assert jnp.allclose(out_big, ref_big, atol=1e-3, rtol=1e-4), (
        float(jnp.max(jnp.abs(out_big - ref_big))))

    print("KERNEL_OK")
</pallas_src>

<mosaic_0001>
module attributes {stable_mosaic.version = 11 : i64} {
  func.func @_resident_kernel(%arg0: i32, %arg1: memref<2xf32, #tpu.memory_space<smem>>, %arg2: memref<8x128xf32, #tpu.memory_space<vmem>>, %arg3: memref<8x128xf32, #tpu.memory_space<vmem>>) attributes {dimension_semantics = [#tpu.dimension_semantics<arbitrary>], iteration_bounds = array<i64: 1>, scalar_prefetch = 0 : i64, scratch_operands = 0 : i64, tpu.core_type = #tpu.core_type<tc>, window_params = [{transform_indices = @transform_0, window_bounds = array<i64: 2>}, {pipeline_mode = #tpu.pipeline_mode<synchronous>, transform_indices = @transform_1, window_bounds = array<i64: 8, 128>}, {pipeline_mode = #tpu.pipeline_mode<synchronous>, transform_indices = @transform_2, window_bounds = array<i64: 8, 128>}]} {
    %c0 = arith.constant 0 : index
    %c0_0 = arith.constant 0 : index
    %0 = vector.load %arg2[%c0, %c0_0] : memref<8x128xf32, #tpu.memory_space<vmem>>, vector<8x128xf32>
    %1 = tpu.iota {dimensions = array<i32: 0>} : vector<8x128xi32>
    %c128_i32 = arith.constant 128 : i32
    %2 = vector.broadcast %c128_i32 : i32 to vector<8x128xi32>
    %3 = arith.muli %1, %2 : vector<8x128xi32>
    %4 = tpu.iota {dimensions = array<i32: 1>} : vector<8x128xi32>
    %5 = arith.addi %3, %4 : vector<8x128xi32>
    %c512_i32 = arith.constant 512 : i32
    %6 = vector.broadcast %c512_i32 : i32 to vector<8x128xi32>
    %7 = arith.cmpi slt, %5, %6 : vector<8x128xi32>
    %cst = arith.constant 0.000000e+00 : f32
    %8 = vector.broadcast %cst : f32 to vector<8x128xf32>
    %9 = arith.select %7, %0, %8 : vector<8x128xi1>, vector<8x128xf32>
    %10 = vector.shape_cast %9 : vector<8x128xf32> to vector<1x8x128xf32>
    %cst_1 = arith.constant dense<0.000000e+00> : vector<1xf32>
    %11 = vector.multi_reduction <add>, %10, %cst_1 [1, 2] : vector<1x8x128xf32> to vector<1xf32>
    %12 = vector.shape_cast %11 : vector<1xf32> to vector<1x1x1xf32>
    %13 = vector.extract %12[0, 0, 0] : f32 from vector<1x1x1xf32>
    %14 = vector.broadcast %13 : f32 to vector<1x1xf32>
    %15 = vector.extract %14[0, 0] : f32 from vector<1x1xf32>
    %cst_2 = arith.constant 0.001953125 : f32
    %16 = arith.mulf %15, %cst_2 : f32
    %17 = vector.broadcast %16 : f32 to vector<8x128xf32>
    %18 = arith.subf %0, %17 : vector<8x128xf32>
    %cst_3 = arith.constant 0.000000e+00 : f32
    %19 = vector.broadcast %cst_3 : f32 to vector<8x128xf32>
    %20 = arith.select %7, %18, %19 : vector<8x128xi1>, vector<8x128xf32>
    %21 = arith.mulf %20, %20 : vector<8x128xf32>
    %22 = vector.shape_cast %21 : vector<8x128xf32> to vector<1x8x128xf32>
    %cst_4 = arith.constant dense<0.000000e+00> : vector<1xf32>
    %23 = vector.multi_reduction <add>, %22, %cst_4 [1, 2] : vector<1x8x128xf32> to vector<1xf32>
    %24 = vector.shape_cast %23 : vector<1xf32> to vector<1x1x1xf32>
    %25 = vector.extract %24[0, 0, 0] : f32 from vector<1x1x1xf32>
    %26 = vector.broadcast %25 : f32 to vector<1x1xf32>
    %27 = vector.extract %26[0, 0] : f32 from vector<1x1xf32>
    %cst_5 = arith.constant 0.001953125 : f32
    %28 = arith.mulf %27, %cst_5 : f32
    %cst_6 = arith.constant 9.99999974E-6 : f32
    %29 = arith.addf %28, %cst_6 : f32
    %30 = math.rsqrt %29 : f32
    %c0_7 = arith.constant 0 : index
    %31 = memref.load %arg1[%c0_7] : memref<2xf32, #tpu.memory_space<smem>>
    %32 = arith.mulf %31, %30 : f32
    %c1 = arith.constant 1 : index
    %33 = memref.load %arg1[%c1] : memref<2xf32, #tpu.memory_space<smem>>
    %34 = arith.mulf %16, %32 : f32
    %35 = arith.subf %33, %34 : f32
    %36 = vector.broadcast %32 : f32 to vector<8x128xf32>
    %37 = arith.mulf %0, %36 : vector<8x128xf32>
    %38 = vector.broadcast %35 : f32 to vector<8x128xf32>
    %39 = arith.addf %37, %38 : vector<8x128xf32>
    %c0_8 = arith.constant 0 : index
    %c0_9 = arith.constant 0 : index
    %40 = vector.load %arg3[%c0_8, %c0_9] : memref<8x128xf32, #tpu.memory_space<vmem>>, vector<8x128xf32>
    tpu.vector_store %arg3[%c0_8, %c0_9], %39 {strides = array<i32>} : memref<8x128xf32, #tpu.memory_space<vmem>>, vector<8x128xf32>,
    return
  }
  func.func @transform_0(%arg0: i32) -> i32 {
    %c0_i32 = arith.constant 0 : i32
    %c0_i32_0 = arith.constant 0 : i32
    return %c0_i32 : i32
  }
  func.func @transform_1(%arg0: i32) -> (i32, i32) {
    %c0_i32 = arith.constant 0 : i32
    %c0_i32_0 = arith.constant 0 : i32
    %c0_i32_1 = arith.constant 0 : i32
    return %c0_i32, %c0_i32_0 : i32, i32
  }
  func.func @transform_2(%arg0: i32) -> (i32, i32) {
    %c0_i32 = arith.constant 0 : i32
    %c0_i32_0 = arith.constant 0 : i32
    %c0_i32_1 = arith.constant 0 : i32
    return %c0_i32, %c0_i32_0 : i32, i32
  }
}

</mosaic_0001>

<bundles_post_ra>
// kernel: tpu_custom_call.1
= control target key start
LH: loop header
LB: loop body
LE: loop exit
PB: predicated region body
PF: predicated region fallthrough
CT: control target
= control target key end

     0   :  { %7 = vsyncpa [#allocation5], 0  ;;  %s224_s0 = inlined_call_operand.hbm [shape: f32[2], index: 0, kind: input, shape index: {}]   ;;  %s225_s1 = inlined_call_operand.hbm [shape: f32[8,128], index: 1, kind: input, shape index: {}]   ;;  %s226_s2 = inlined_call_operand.hbm [shape: f32[8,128], index: 2, kind: output, shape index: {}]  }
   0x1   :  { %8 = vsyncpa [#allocation3], 0 }
   0x2   :  { %9 = vsyncpa [#allocation4], 0  ;;  %s110_s11 = scalar_lea.hbm %s224_s0, 16 }
   0x3   :  { %p111_p0 = scmp.ne.s32.totalorder %s224_s0, %s110_s11  ;;  %p114_p1 = scmp.lt.u32.totalorder %s110_s11, %s224_s0 }
   0x5   :  { %p116_p2 = pnand %p114_p1, %p111_p0 }
   0x7   :  { %119 = shalt.err (!%p116_p2)
}
   0x8   :  { %s170_s16 = smov [#allocation2]   ;;  %s171_s19 = smov [#allocation6]  }
   0x9   :  { %17 = dma.hbm_to_smem %s224_s0, 16, %s170_s16, [#allocation5]  }
   0xa   :  { %s24_s20 = sshll.u32 %s171_s19, 4  ;;  %s120_s23 = scalar_lea.hbm %s225_s1, 128  ;;  %s25_s20 = int_to_ptr.vmem [resolvable:$true] %s24_s20 }
   0xb   :  { %p121_p3 = scmp.ne.s32.totalorder %s225_s1, %s120_s23  ;;  %p124_p4 = scmp.lt.u32.totalorder %s120_s23, %s225_s1 }
   0xd   :  { %p126_p5 = pnand %p124_p4, %p121_p3 }
   0xf   :  { %129 = shalt.err (!%p126_p5)
}
  0x10   :  { %s130_s28 = scalar_lea.vmem %s25_s20, 128  ;;  %p135_p7 = scmp.lt.s32.totalorder %s25_s20, %s25_s20 }
  0x11   :  { %p131_p6 = scmp.ne.s32.totalorder %s25_s20, %s130_s28  ;;  %p136_p8 = scmp.lt.s32.totalorder %s130_s28, %s130_s28 }
  0x13   :  { %p137_p9 = por %p136_p8, %p135_p7 }
  0x15   :  { %p138_p10 = pnand %p137_p9, %p131_p6 }
  0x17   :  { %141 = shalt.err (!%p138_p10)
}
  0x18   :  { %27 = dma.hbm_to_vmem [thread:$0]  %s225_s1, 128, %s25_s20, [#allocation3]  }
  0x19   :  { %164 = dma.done.wait [#allocation5], 16  }
  0x1a   :  { %165 = vsyncadd [#allocation5], 4294967280 }
  0x1b   :  { %166 = dma.done.wait [#allocation3], 128  }
  0x1c   :  { %167 = vsyncadd [#allocation3], 4294967168 }
  0x1d   :  { %34 = sfence }
  0x1e   :  { %v36_v0 = vlaneseq  ;;  %v35_v4 = vld [vmem:[#allocation6] sm:$0xff]  ;;  %s72_s6 = sld [smem:[#allocation2]]  ;;  %s98_s7 = sld [smem:[#allocation2 + $0x1]] }
  0x1f   :  { %s172_s12 = smov [#allocation7]  }
  0x20   :  { %v37_v1 = vshrl.u32 %v36_v0, 7  ;;  %v40_v2 = vand.u32 127, %v36_v0  ;;  %s88_s13 = sshll.u32 %s172_s12, 4  ;;  %s89_s13 = int_to_ptr.vmem [resolvable:$true] %s88_s13 }
  0x21   :  { %s142_s14 = scalar_lea.vmem %s89_s13, 128  ;;  %p147_p12 = scmp.lt.s32.totalorder %s89_s13, %s89_s13 }
  0x22   :  { %v38_v3 = vmul.u32 128, %v37_v1  ;;  %p143_p11 = scmp.ne.s32.totalorder %s89_s13, %s142_s14  ;;  %p148_p13 = scmp.lt.s32.totalorder %s142_s14, %s142_s14 }
  0x24   :  { %v41_v5 = vadd.s32 %v40_v2, %v38_v3  ;;  %p149_p0 = por %p148_p13, %p147_p12 }
  0x26   :  { %vm42_vm0 = vcmp.lt.s32.totalorder %v41_v5, 512  ;;  %p150_p1 = pnand %p149_p0, %p143_p11 }
  0x27   :  { %v43_v6 = vsel %vm42_vm0, %v35_v4, 0.0 }
  0x28   :  { %44 = vadd.xlane.f32.xlu0 %v43_v6 }
  0xb5   :  { %v45_v7 = vpop.xlane.xlu0 %44 }
  0xb6   :  { %v46_v8 = vrot.slane %v45_v7, 4 }
  0xb8   :  { %v47_v9 = vadd.f32 %v46_v8, %v45_v7 }
  0xba   :  { %v48_v10 = vrot.slane %v47_v9, 2 }
  0xbc   :  { %v49_v11 = vadd.f32 %v48_v10, %v47_v9 }
  0xbe   :  { %v50_v12 = vrot.slane %v49_v11, 1 }
  0xc0   :  { %v51_v13 = vadd.f32 %v50_v12, %v49_v11 }
  0xc2   :  { %99 = vpush %v51_v13 }
  0xf3   :  { %s100_s1 = spop %99 }
  0xf4   :  { %s53_s30 = smul.f32 0.001953125, %s100_s1 }
  0xf6   :  { %v54_v14 = vstv %s53_s30 }
  0xf7   :  { %v55_v15 = vsub.f32 %v35_v4, %v54_v14 }
  0xf9   :  { %v56_v16 = vsel %vm42_vm0, %v55_v15, 0.0 }
  0xfa   :  { %v57_v17 = vmul.f32 %v56_v16, %v56_v16 }
  0xfc   :  { %58 = vadd.xlane.f32.xlu0 %v57_v17 }
 0x189   :  { %v59_v18 = vpop.xlane.xlu0 %58 }
 0x18a   :  { %v60_v19 = vrot.slane %v59_v18, 4 }
 0x18c   :  { %v61_v20 = vadd.f32 %v60_v19, %v59_v18 }
 0x18e   :  { %v62_v21 = vrot.slane %v61_v20, 2 }
 0x190   :  { %v63_v22 = vadd.f32 %v62_v21, %v61_v20 }
 0x192   :  { %v64_v23 = vrot.slane %v63_v22, 1 }
 0x194   :  { %v65_v24 = vadd.f32 %v64_v23, %v63_v22 }
 0x196   :  { %101 = vpush %v65_v24 }
 0x1c7   :  { %s102_s3 = spop %101 }
 0x1c8   :  { %s67_s4 = smul.f32 0.001953125, %s102_s3 }
 0x1ca   :  { %s68_s5 = sadd.f32 1e-05, %s67_s4 }
 0x1cc   :  { %v69_v25 = vstv %s68_s5 }
 0x1cd   :  { %108 = vrsqrt.f32 %v69_v25 }
 0x1d7   :  { %v109_v26 = vpop.eup %108 }
 0x1d8   :  { %103 = vpush %v109_v26 }
 0x209   :  { %s104_s8 = spop %103 }
 0x20a   :  { %s73_s9 = smul.f32 %s104_s8, %s72_s6 }
 0x20c   :  { %s75_s10 = smul.f32 %s73_s9, %s53_s30  ;;  %v77_v27 = vstv %s73_s9 }
 0x20d   :  { %v78_v28 = vmul.f32 %v77_v27, %v35_v4 }
 0x20e   :  { %s76_s11 = ssub.f32 %s98_s7, %s75_s10 }
 0x210   :  { %v79_v29 = vstv %s76_s11 }
 0x211   :  { %v80_v30 = vadd.f32 %v79_v29, %v78_v28 }
 0x213   :  { %81 = vst [vmem:[#allocation7] sm:$0xff] %v80_v30 }
 0x214   :  { %153 = shalt.err (!%p150_p1)
}
 0x215   :  { %s154_s17 = scalar_lea.hbm %s226_s2, 128 }
 0x216   :  { %p155_p2 = scmp.ne.s32.totalorder %s226_s2, %s154_s17  ;;  %p158_p3 = scmp.lt.u32.totalorder %s154_s17, %s226_s2 }
 0x218   :  { %p160_p4 = pnand %p158_p3, %p155_p2 }
 0x21a   :  { %163 = shalt.err (!%p160_p4)
}
 0x21b   :  { %91 = dma.vmem_to_hbm [thread:$0]  %s89_s13, 128, %s226_s2, [#allocation4]  }
 0x21c   :  { %168 = dma.done.wait [#allocation4], 128  }
 0x21d   :  { %169 = vsyncadd [#allocation4], 4294967168 }
 0x21e   :  { %95 = vsyncpa [#allocation3], 1 }
 0x21f   :  { %96 = vsyncpa [#allocation4], 1 }
 0x220   :  { %97 = vsyncpa [#allocation5], 1 }

</bundles_post_ra>
